<compile_context>
chip_gen: v6e
topology: v6e:2x2x1
jax: 0.10.0
libtpu: 0.0.40
codegen_flags: <defaults>
</compile_context>

<pallas_src>
import functools

import jax
import jax.numpy as jnp
from jax.experimental import pallas as pl
from jax.experimental.pallas import tpu as pltpu

BN_EPS = 1e-5
_RESIDENT_WEIGHT_BYTES = 4 * 1024 * 1024   # keep whole weight VMEM-resident below this


def _round_up(v, m):
    return (v + m - 1) // m * m


def _pick_tm(M):
    """Pick the M tile: minimize padded rows, prefer >=2 parallel tiles (v7x has 2
    TensorCores), then prefer the largest tile (fewer steps, less weight streaming)."""
    best = None
    for tm in range(128, 1025, 128):
        m_pad = _round_up(M, tm)
        tiles = m_pad // tm
        penalty = 1 if (tiles < 2 and M >= 256) else 0   # keep both TCs busy when possible
        key = (penalty, m_pad - M, -tm)
        if best is None or key < best[0]:
            best = (key, tm)
    return best[1]


def _conv_stats_kernel(p_ref, w_ref, conv_ref, stats_ref, acc_ref, *, tk, resident_w):
    """Pass 1: tiled conv-as-matmul with a K-axis f32 accumulator.

    On the last K step the accumulator is flushed (bf16) to the conv output tile and
    the per-channel partial BN statistics (sum, sum-of-squares) for this M tile are
    written to rows 0/1 of an (8, Cp) stats tile.
    """
    k = pl.program_id(1)

    if resident_w:
        # Whole (K_pad, Cp) weight lives in VMEM (constant-index BlockSpec, DMA'd from
        # HBM once); slice the current K chunk on-chip. tk is a multiple of 128.
        start = pl.multiple_of(k * tk, tk)
        w = w_ref[pl.ds(start, tk), :]
    else:
        w = w_ref[...]

    prod = jnp.dot(p_ref[...], w, preferred_element_type=jnp.float32)

    @pl.when(k == 0)
    def _():
        acc_ref[...] = prod            # first step writes directly (no zero-fill + add)

    @pl.when(k > 0)
    def _():
        acc_ref[...] += prod

    @pl.when(k == pl.num_programs(1) - 1)
    def _():
        acc = acc_ref[...]
        conv_ref[...] = acc.astype(conv_ref.dtype)            # bf16 intermediate
        ch_sum = jnp.sum(acc, axis=0, keepdims=True)           # (1, Cp), f32-exact stats
        ch_sq = jnp.sum(acc * acc, axis=0, keepdims=True)      # (1, Cp)
        row = jax.lax.broadcasted_iota(jnp.int32, (8, acc.shape[1]), 0)
        stats_ref[...] = jnp.where(row == 0, ch_sum,
                                   jnp.where(row == 1, ch_sq, 0.0))


def _bn_act_kernel(conv_ref, scale_ref, shift_ref, out_ref, *, act):
    """Pass 2: per-channel affine (folded BN) + activation. f32 math, parallel sweep."""
    y = conv_ref[...].astype(jnp.float32) * scale_ref[...] + shift_ref[...]
    if act == "relu":
        y = jnp.maximum(y, 0.0)
    else:                                   # LeakyReLU(0.2)
        y = jnp.where(y > 0.0, y, 0.2 * y)
    out_ref[...] = y.astype(out_ref.dtype)


def block_forward(x, weight_oihw, gamma, beta, *, act="relu", use_dropout=False,
                  input_format="NCHW", output_format="NCHW",
                  compute_dtype=jnp.bfloat16):
    """Forward of Block(down=True): (N, Cin, H, W) -> (N, Cout, H/2, W/2).

    Pass input_format/output_format="NHWC" when chaining Blocks to skip the two
    full-tensor NCHW<->NHWC transpose round trips per block.
    """
    del use_dropout  # TODO(synk): use_dropout=True (training Dropout(0.5)) needs pltpu.prng_*.
    if input_format == "NCHW":
        x = jnp.transpose(x, (0, 2, 3, 1))
    N, H, W, Cin = x.shape
    Cout = weight_oihw.shape[0]
    KH = KW = 4
    S, P = 2, 1
    OH = (H + 2 * P - KH) // S + 1
    OW = (W + 2 * P - KW) // S + 1
    out_dtype = x.dtype

    # ---- glue: reflect pad + im2col unfold (pure data movement, bf16) ----
    # TODO(synk): assemble the 16 taps on-chip from the padded NHWC input
    # (memory_space=pl.ANY + halo DMA per M-tile row band) to avoid materializing the
    # ~4x-input im2col matrix in HBM; kept host-side here for lowering robustness with
    # small / unaligned Cin.
    xp = jnp.pad(x, ((0, 0), (P, P), (P, P), (0, 0)), mode="reflect")
    taps = []
    for kh in range(KH):
        for kw in range(KW):
            taps.append(xp[:, kh:kh + S * OH:S, kw:kw + S * OW:S, :])   # (N, OH, OW, Cin)
    M = N * OH * OW
    K = KH * KW * Cin
    patches = jnp.stack(taps, axis=3).reshape(M, K)

    # ---- tiling: 128-multiple tiles, lane-dense (padded) Cout ----
    Cp = _round_up(Cout, 128)
    tm = _pick_tm(M)
    tk = min(512, _round_up(K, 128))     # >=256 whenever K allows (v6e/v7x 256-wide MXU)
    M_pad = _round_up(M, tm)
    K_pad = _round_up(K, tk)
    m_tiles = M_pad // tm
    k_tiles = K_pad // tk
    resident_w = (K_pad * Cp * 2) <= _RESIDENT_WEIGHT_BYTES

    # bf16 MXU operands (zero padding is exact, so BN sums over padded rows/cols stay correct).
    patches = jnp.pad(patches, ((0, M_pad - M), (0, K_pad - K))).astype(compute_dtype)
    wmat = jnp.transpose(weight_oihw, (2, 3, 1, 0)).reshape(K, Cout)
    wmat = jnp.pad(wmat, ((0, K_pad - K), (0, Cp - Cout))).astype(compute_dtype)

    if resident_w:
        w_spec = pl.BlockSpec((K_pad, Cp), lambda i, k: (0, 0))    # constant index: fetched once
    else:
        w_spec = pl.BlockSpec((tk, Cp), lambda i, k: (k, 0))       # streamed per K step

    # ---- pass 1: tiled conv matmul + per-tile BN partial statistics ----
    conv_out, stats = pl.pallas_call(
        functools.partial(_conv_stats_kernel, tk=tk, resident_w=resident_w),
        out_shape=(
            jax.ShapeDtypeStruct((M_pad, Cp), compute_dtype),      # bf16 intermediate
            jax.ShapeDtypeStruct((m_tiles * 8, Cp), jnp.float32),
        ),
        grid=(m_tiles, k_tiles),
        in_specs=[
            pl.BlockSpec((tm, tk), lambda i, k: (i, k)),
            w_spec,
        ],
        out_specs=[
            pl.BlockSpec((tm, Cp), lambda i, k: (i, 0)),
            pl.BlockSpec((8, Cp), lambda i, k: (i, 0)),
        ],
        scratch_shapes=[pltpu.VMEM((tm, Cp), jnp.float32)],
        compiler_params=pltpu.CompilerParams(
            dimension_semantics=("parallel", "arbitrary"),
            vmem_limit_bytes=32 * 1024 * 1024),   # working set << 32 MiB, safe on v7x's 64 MiB
    )(patches, wmat)

    # ---- finalize BN statistics (tiny per-channel math, plain JAX, f32) ----
    # Note: var = E[x^2] - mean^2 in f32; fine at pix2pix activation scales. Switch to a
    # two-pass / Welford scheme if per-channel means ever dwarf the per-channel std.
    stats = stats.reshape(m_tiles, 8, Cp)
    ch_sum = jnp.sum(stats[:, 0, :], axis=0)
    ch_sq = jnp.sum(stats[:, 1, :], axis=0)
    mean = ch_sum / M
    var = jnp.maximum(ch_sq / M - mean * mean, 0.0)     # biased (training-mode) variance
    inv_std = jax.lax.rsqrt(var + BN_EPS)
    gamma_p = jnp.pad(gamma.astype(jnp.float32), (0, Cp - Cout))
    beta_p = jnp.pad(beta.astype(jnp.float32), (0, Cp - Cout))
    scale_v = gamma_p * inv_std
    shift_v = beta_p - mean * scale_v
    scale = scale_v.reshape(1, Cp)
    shift = shift_v.reshape(1, Cp)

    # ---- pass 2: normalize + activation (parallel, mem-bound elementwise sweep) ----
    out_flat = pl.pallas_call(
        functools.partial(_bn_act_kernel, act=act),
        out_shape=jax.ShapeDtypeStruct((M_pad, Cp), out_dtype),
        grid=(m_tiles,),
        in_specs=[
            pl.BlockSpec((tm, Cp), lambda i: (i, 0)),
            pl.BlockSpec((1, Cp), lambda i: (0, 0)),   # constant index -> fetched once
            pl.BlockSpec((1, Cp), lambda i: (0, 0)),
        ],
        out_specs=pl.BlockSpec((tm, Cp), lambda i: (i, 0)),
        compiler_params=pltpu.CompilerParams(
            dimension_semantics=("parallel",),
            vmem_limit_bytes=32 * 1024 * 1024),
    )(conv_out, scale, shift)

    out = out_flat[:M, :Cout].reshape(N, OH, OW, Cout)
    if output_format == "NCHW":
        out = jnp.transpose(out, (0, 3, 1, 2))
    return out


def _reference_forward(x_nchw, weight_oihw, gamma, beta, act="relu",
                       conv_dtype=jnp.float32, conv_store_dtype=None):
    """Pure-JAX reference matching the PyTorch module (training-mode BN).

    conv_dtype / conv_store_dtype let us mirror the kernel's quantization points
    (bf16 MXU operands, bf16-stored conv intermediate, f32 BN statistics) for a
    tight numerical check.
    """
    xp = jnp.pad(x_nchw, ((0, 0), (0, 0), (1, 1), (1, 1)), mode="reflect")
    y = jax.lax.conv_general_dilated(
        xp.astype(conv_dtype), weight_oihw.astype(conv_dtype),
        window_strides=(2, 2), padding="VALID",
        dimension_numbers=("NCHW", "OIHW", "NCHW"),
        preferred_element_type=jnp.float32)
    mean = jnp.mean(y, axis=(0, 2, 3), keepdims=True)         # stats from f32 conv (as kernel)
    var = jnp.mean((y - mean) ** 2, axis=(0, 2, 3), keepdims=True)
    if conv_store_dtype is not None:
        y = y.astype(conv_store_dtype).astype(jnp.float32)    # mirror bf16 intermediate
    y = (y - mean) / jnp.sqrt(var + BN_EPS)
    y = y * gamma.reshape(1, -1, 1, 1) + beta.reshape(1, -1, 1, 1)
    return jnp.maximum(y, 0.0) if act == "relu" else jnp.where(y > 0.0, y, 0.2 * y)


if __name__ == "__main__":
    key = jax.random.PRNGKey(0)
    kx, kw = jax.random.split(key)

    N, Cin, H, W = 2, 4, 16, 16
    Cout = 8

    x = jax.random.normal(kx, (N, Cin, H, W), dtype=jnp.float32)
    weight = jax.random.normal(kw, (Cout, Cin, 4, 4), dtype=jnp.float32) * 0.1
    gamma = jnp.ones((Cout,), dtype=jnp.float32)   # BatchNorm2d affine at PyTorch init
    beta = jnp.zeros((Cout,), dtype=jnp.float32)

    out = block_forward(x, weight, gamma, beta, act="relu", use_dropout=False)
    out = jax.block_until_ready(out)
    assert out.shape == (N, Cout, H // 2, W // 2), out.shape

    # Tight check: reference mirrors the kernel's quantization points exactly
    # (bf16 conv operands, bf16-stored conv intermediate, f32 BN statistics).
    ref_tight = _reference_forward(x, weight, gamma, beta, act="relu",
                                   conv_dtype=jnp.bfloat16,
                                   conv_store_dtype=jnp.bfloat16)
    err_tight = float(jnp.max(jnp.abs(out - ref_tight)))
    assert jnp.allclose(out, ref_tight, atol=5e-3, rtol=5e-3), err_tight

    # Sanity check vs the full-f32 PyTorch-equivalent reference (bf16 MXU operands and
    # the bf16 intermediate introduce ~1e-2-level differences: the intended trade-off).
    ref_f32 = _reference_forward(x, weight, gamma, beta, act="relu",
                                 conv_dtype=jnp.float32)
    err_f32 = float(jnp.max(jnp.abs(out - ref_f32)))
    assert jnp.allclose(out, ref_f32, atol=6e-2, rtol=6e-2), err_f32

    print("KERNEL_OK")
</pallas_src>

<mosaic_0001>
module attributes {stable_mosaic.version = 11 : i64} {
  func.func @_conv_stats_kernel(%arg0: i32, %arg1: i32, %arg2: memref<128x128xbf16, #tpu.memory_space<vmem>>, %arg3: memref<128x128xbf16, #tpu.memory_space<vmem>>, %arg4: memref<128x128xbf16, #tpu.memory_space<vmem>>, %arg5: memref<8x128xf32, #tpu.memory_space<vmem>>, %arg6: memref<128x128xf32, #tpu.memory_space<vmem>>) attributes {dimension_semantics = [#tpu.dimension_semantics<parallel>, #tpu.dimension_semantics<arbitrary>], iteration_bounds = array<i64: 1, 1>, scalar_prefetch = 0 : i64, scratch_operands = 1 : i64, tpu.core_type = #tpu.core_type<tc>, window_params = [{transform_indices = @transform_0, window_bounds = array<i64: 128, 128>}, {pipeline_mode = #tpu.pipeline_mode<synchronous>, transform_indices = @transform_1, window_bounds = array<i64: 128, 128>}, {transform_indices = @transform_2, window_bounds = array<i64: 128, 128>}, {transform_indices = @transform_3, window_bounds = array<i64: 8, 128>}]} {
    %c128_i32 = arith.constant 128 : i32
    %0 = arith.muli %arg1, %c128_i32 : i32
    %1 = tpu.assume_multiple %0, 128 : i32
    %2 = arith.index_cast %1 : i32 to index
    %c0 = arith.constant 0 : index
    %3 = vector.load %arg3[%2, %c0] : memref<128x128xbf16, #tpu.memory_space<vmem>>, vector<128x128xbf16>
    %c0_0 = arith.constant 0 : index
    %c0_1 = arith.constant 0 : index
    %4 = vector.load %arg2[%c0_0, %c0_1] : memref<128x128xbf16, #tpu.memory_space<vmem>>, vector<128x128xbf16>
    %cst = arith.constant dense<0.000000e+00> : vector<128x128xf32>
    %5 = tpu.matmul %4, %3, %cst {dimension_numbers = #tpu.dot_dimension_numbers<[1], [0], [0], [1], [0, 0, 1, 1], [], []>} : vector<128x128xbf16>, vector<128x128xbf16>, vector<128x128xf32> -> vector<128x128xf32>
    %c0_i32 = arith.constant 0 : i32
    %6 = arith.cmpi eq, %arg1, %c0_i32 : i32
    %7 = arith.extui %6 : i1 to i32
    %c0_i32_2 = arith.constant 0 : i32
    %8 = arith.cmpi ne, %7, %c0_i32_2 : i32
    scf.if %8 {
      %c0_7 = arith.constant 0 : index
      %c0_8 = arith.constant 0 : index
      %15 = vector.load %arg6[%c0_7, %c0_8] : memref<128x128xf32, #tpu.memory_space<vmem>>, vector<128x128xf32>
      tpu.vector_store %arg6[%c0_7, %c0_8], %5 {strides = array<i32>} : memref<128x128xf32, #tpu.memory_space<vmem>>, vector<128x128xf32>,
    } else {
    }
    %c0_i32_3 = arith.constant 0 : i32
    %9 = arith.cmpi sgt, %arg1, %c0_i32_3 : i32
    %10 = arith.extui %9 : i1 to i32
    %c0_i32_4 = arith.constant 0 : i32
    %11 = arith.cmpi ne, %10, %c0_i32_4 : i32
    scf.if %11 {
      %c0_7 = arith.constant 0 : index
      %c0_8 = arith.constant 0 : index
      %15 = vector.load %arg6[%c0_7, %c0_8] : memref<128x128xf32, #tpu.memory_space<vmem>>, vector<128x128xf32>
      %16 = arith.addf %15, %5 : vector<128x128xf32>
      %c0_9 = arith.constant 0 : index
      %c0_10 = arith.constant 0 : index
      %17 = vector.load %arg6[%c0_9, %c0_10] : memref<128x128xf32, #tpu.memory_space<vmem>>, vector<128x128xf32>
      tpu.vector_store %arg6[%c0_9, %c0_10], %16 {strides = array<i32>} : memref<128x128xf32, #tpu.memory_space<vmem>>, vector<128x128xf32>,
    } else {
    }
    %c0_i32_5 = arith.constant 0 : i32
    %12 = arith.cmpi eq, %arg1, %c0_i32_5 : i32
    %13 = arith.extui %12 : i1 to i32
    %c0_i32_6 = arith.constant 0 : i32
    %14 = arith.cmpi ne, %13, %c0_i32_6 : i32
    scf.if %14 {
      %c0_7 = arith.constant 0 : index
      %c0_8 = arith.constant 0 : index
      %15 = vector.load %arg6[%c0_7, %c0_8] : memref<128x128xf32, #tpu.memory_space<vmem>>, vector<128x128xf32>
      %16 = arith.truncf %15 : vector<128x128xf32> to vector<128x128xbf16>
      %c0_9 = arith.constant 0 : index
      %c0_10 = arith.constant 0 : index
      %17 = vector.load %arg4[%c0_9, %c0_10] : memref<128x128xbf16, #tpu.memory_space<vmem>>, vector<128x128xbf16>
      tpu.vector_store %arg4[%c0_9, %c0_10], %16 {strides = array<i32>} : memref<128x128xbf16, #tpu.memory_space<vmem>>, vector<128x128xbf16>,
      %cst_11 = arith.constant dense<0.000000e+00> : vector<128xf32>
      %18 = vector.multi_reduction <add>, %15, %cst_11 [0] : vector<128x128xf32> to vector<128xf32>
      %19 = vector.shape_cast %18 : vector<128xf32> to vector<1x128xf32>
      %20 = arith.mulf %15, %15 : vector<128x128xf32>
      %cst_12 = arith.constant dense<0.000000e+00> : vector<128xf32>
      %21 = vector.multi_reduction <add>, %20, %cst_12 [0] : vector<128x128xf32> to vector<128xf32>
      %22 = vector.shape_cast %21 : vector<128xf32> to vector<1x128xf32>
      %23 = tpu.iota {dimensions = array<i32: 0>} : vector<8x128xi32>
      %c0_i32_13 = arith.constant 0 : i32
      %24 = vector.broadcast %c0_i32_13 : i32 to vector<8x128xi32>
      %25 = arith.cmpi eq, %23, %24 : vector<8x128xi32>
      %c1_i32 = arith.constant 1 : i32
      %26 = vector.broadcast %c1_i32 : i32 to vector<8x128xi32>
      %27 = arith.cmpi eq, %23, %26 : vector<8x128xi32>
      %cst_14 = arith.constant 0.000000e+00 : f32
      %28 = vector.shape_cast %22 : vector<1x128xf32> to vector<1x128xf32>
      %29 = vector.broadcast %28 : vector<1x128xf32> to vector<8x128xf32>
      %30 = vector.broadcast %cst_14 : f32 to vector<8x128xf32>
      %31 = arith.select %27, %29, %30 : vector<8x128xi1>, vector<8x128xf32>
      %32 = vector.shape_cast %19 : vector<1x128xf32> to vector<1x128xf32>
      %33 = vector.broadcast %32 : vector<1x128xf32> to vector<8x128xf32>
      %34 = arith.select %25, %33, %31 : vector<8x128xi1>, vector<8x128xf32>
      %c0_15 = arith.constant 0 : index
      %c0_16 = arith.constant 0 : index
      %35 = vector.load %arg5[%c0_15, %c0_16] : memref<8x128xf32, #tpu.memory_space<vmem>>, vector<8x128xf32>
      tpu.vector_store %arg5[%c0_15, %c0_16], %34 {strides = array<i32>} : memref<8x128xf32, #tpu.memory_space<vmem>>, vector<8x128xf32>,
    } else {
    }
    return
  }
  func.func @transform_0(%arg0: i32, %arg1: i32) -> (i32, i32) {
    %c0_i32 = arith.constant 0 : i32
    return %arg0, %arg1 : i32, i32
  }
  func.func @transform_1(%arg0: i32, %arg1: i32) -> (i32, i32) {
    %c0_i32 = arith.constant 0 : i32
    %c0_i32_0 = arith.constant 0 : i32
    %c0_i32_1 = arith.constant 0 : i32
    return %c0_i32, %c0_i32_0 : i32, i32
  }
  func.func @transform_2(%arg0: i32, %arg1: i32) -> (i32, i32) {
    %c0_i32 = arith.constant 0 : i32
    %c0_i32_0 = arith.constant 0 : i32
    return %arg0, %c0_i32 : i32, i32
  }
  func.func @transform_3(%arg0: i32, %arg1: i32) -> (i32, i32) {
    %c0_i32 = arith.constant 0 : i32
    %c0_i32_0 = arith.constant 0 : i32
    return %arg0, %c0_i32 : i32, i32
  }
}

</mosaic_0001>

<bundles_post_ra>
// kernel: tpu_custom_call.1
= control target key start
LH: loop header
LB: loop body
LE: loop exit
PB: predicated region body
PF: predicated region fallthrough
CT: control target
= control target key end

     0   :  { %9 = vsyncpa [#allocation4], 0  ;;  %s884_s0 = inlined_call_operand.hbm [shape: bf16[128,128], index: 0, kind: input, shape index: {}]   ;;  %s885_s1 = inlined_call_operand.hbm [shape: bf16[128,128], index: 1, kind: input, shape index: {}]   ;;  %s886_s2 = inlined_call_operand.hbm [shape: bf16[128,128], index: 2, kind: output, shape index: {0}]   ;;  %s887_s3 = inlined_call_operand.hbm [shape: f32[8,128], index: 3, kind: output, shape index: {1}]  }
   0x1   :  { %10 = vsyncpa [#allocation7], 0 }
   0x2   :  { %11 = vsyncpa [#allocation5], 0 }
   0x3   :  { %12 = vsyncpa [#allocation10], 0  ;;  %s813_s12 = smov [#allocation3]  }
   0x4   :  { %s18_s13 = sshll.u32 %s813_s12, 4  ;;  %s19_s13 = int_to_ptr.vmem [resolvable:$true] %s18_s13 }
   0x5   :  { %s733_s14 = scalar_lea.vmem %s19_s13, 1024  ;;  %p738_p1 = scmp.lt.s32.totalorder %s19_s13, %s19_s13 }
   0x6   :  { %p734_p0 = scmp.ne.s32.totalorder %s19_s13, %s733_s14  ;;  %p739_p2 = scmp.lt.s32.totalorder %s733_s14, %s733_s14 }
   0x8   :  { %p740_p3 = por %p739_p2, %p738_p1 }
   0xa   :  { %p741_p4 = pnand %p740_p3, %p734_p0 }
   0xc   :  { %744 = shalt.err (!%p741_p4)
}
   0xd   :  { %s814_s15 = smov 64   ;;  %s815_s16 = smov 4  }
   0xe   :  { %24 = dma.hbm_to_vmem [thread:$0]  %s884_s0, 1024, %s19_s13, [#allocation4], %s814_s15, %s814_s15, %s815_s16  }
   0xf   :  { %s816_s19 = smov [#allocation6]  }
  0x10   :  { %s30_s20 = sshll.u32 %s816_s19, 4  ;;  %s31_s20 = int_to_ptr.vmem [resolvable:$true] %s30_s20 }
  0x11   :  { %s753_s21 = scalar_lea.vmem %s31_s20, 1024  ;;  %p758_p6 = scmp.lt.s32.totalorder %s31_s20, %s31_s20 }
  0x12   :  { %p754_p5 = scmp.ne.s32.totalorder %s31_s20, %s753_s21  ;;  %p759_p7 = scmp.lt.s32.totalorder %s753_s21, %s753_s21 }
  0x14   :  { %p760_p8 = por %p759_p7, %p758_p6 }
  0x16   :  { %p761_p9 = pnand %p760_p8, %p754_p5 }
  0x18   :  { %764 = shalt.err (!%p761_p9)
}
  0x19   :  { %36 = dma.hbm_to_vmem [thread:$0]  %s885_s1, 1024, %s31_s20, [#allocation7], %s814_s15, %s814_s15, %s815_s16  }
  0x1a   :  { %805 = dma.done.wait [#allocation4], 1024  }
  0x1b   :  { %806 = vsyncadd [#allocation4], 4294966272 }
  0x1c   :  { %807 = dma.done.wait [#allocation7], 1024  }
  0x1d   :  { %808 = vsyncadd [#allocation7], 4294966272  ;;  %v709_v0 = vld [vmem:[#allocation6 + $0x38] sm:$0xff]   ;;  %v710_v1 = vld [vmem:[#allocation6 + $0x30] sm:$0xff]   ;;  %s817_s0 = smov [#allocation8]  }
  0x1e   :  { %655 = vmatprep.subr.bf16.mxu0 %v709_v0  ;;  %687 = vmatprep.subr.bf16.mxu1 %v709_v0  ;;  %v711_v2 = vld [vmem:[#allocation6 + $0x28] sm:$0xff]   ;;  %v712_v3 = vld [vmem:[#allocation6 + $0x20] sm:$0xff]   ;;  %v713_v5 = vld [vmem:[#allocation6 + $0x18] sm:$0xff]   ;;  %s515_s1 = sshll.u32 %s817_s0, 4  ;;  %s516_s1 = int_to_ptr.vmem [resolvable:$true] %s515_s1 }
  0x1f   :  { %656 = vmatpush3.bf16.msra.mxu0 %v709_v0  ;;  %695 = vmatpush3.bf16.msra.mxu1 %v709_v0  ;;  %v717_v4 = vld [vmem:[#allocation3] sm:$0xff]   ;;  %v714_v7 = vld [vmem:[#allocation6 + $0x10] sm:$0xff]   ;;  %v715_v8 = vld [vmem:[#allocation6 + $0x8] sm:$0xff]   ;;  %s765_s24 = scalar_lea.vmem %s516_s1, 1024  ;;  %p770_p11 = scmp.lt.s32.totalorder %s516_s1, %s516_s1 }
  0x20   :  { %657 = vmatprep.subr.bf16.mxu0 %v710_v1  ;;  %688 = vmatprep.subr.bf16.mxu1 %v710_v1  ;;  %v721_v6 = vld [vmem:[#allocation3 + $0x20] sm:$0xff]   ;;  %v718_v10 = vld [vmem:[#allocation3 + $0x8] sm:$0xff]   ;;  %v719_v12 = vld [vmem:[#allocation3 + $0x10] sm:$0xff]   ;;  %p766_p10 = scmp.ne.s32.totalorder %s516_s1, %s765_s24  ;;  %p771_p12 = scmp.lt.s32.totalorder %s765_s24, %s765_s24 }
  0x21   :  { %671 = vmatprep.mubr.bf16.mxu0 %v717_v4  ;;  %679 = vmatprep.mubr.bf16.mxu1 %v721_v6  ;;  %v716_v9 = vld [vmem:[#allocation6] sm:$0xff]   ;;  %v722_v11 = vld [vmem:[#allocation3 + $0x28] sm:$0xff]   ;;  %v723_v13 = vld [vmem:[#allocation3 + $0x30] sm:$0xff]  }
  0x22   :  { %v720_v14 = vld [vmem:[#allocation3 + $0x18] sm:$0xff]   ;;  %p772_p13 = por %p771_p12, %p770_p11 }
  0x23   :  { %658 = vmatpush3.bf16.msra.mxu0 %v710_v1  ;;  %696 = vmatpush3.bf16.msra.mxu1 %v710_v1  ;;  %v724_v15 = vld [vmem:[#allocation3 + $0x38] sm:$0xff]  }
  0x24   :  { %659 = vmatprep.subr.bf16.mxu0 %v711_v2  ;;  %689 = vmatprep.subr.bf16.mxu1 %v711_v2  ;;  %p773_p0 = pnand %p772_p13, %p766_p10 }
  0x27   :  { %660 = vmatpush3.bf16.msra.mxu0 %v711_v2  ;;  %697 = vmatpush3.bf16.msra.mxu1 %v711_v2 }
  0x28   :  { %661 = vmatprep.subr.bf16.mxu0 %v712_v3  ;;  %690 = vmatprep.subr.bf16.mxu1 %v712_v3 }
  0x2b   :  { %662 = vmatpush3.bf16.msra.mxu0 %v712_v3  ;;  %698 = vmatpush3.bf16.msra.mxu1 %v712_v3 }
  0x2c   :  { %663 = vmatprep.subr.bf16.mxu0 %v713_v5  ;;  %691 = vmatprep.subr.bf16.mxu1 %v713_v5 }
  0x2f   :  { %664 = vmatpush3.bf16.msra.mxu0 %v713_v5  ;;  %699 = vmatpush3.bf16.msra.mxu1 %v713_v5 }
  0x30   :  { %665 = vmatprep.subr.bf16.mxu0 %v714_v7  ;;  %692 = vmatprep.subr.bf16.mxu1 %v714_v7 }
  0x33   :  { %666 = vmatpush3.bf16.msra.mxu0 %v714_v7  ;;  %700 = vmatpush3.bf16.msra.mxu1 %v714_v7 }
  0x34   :  { %667 = vmatprep.subr.bf16.mxu0 %v715_v8  ;;  %693 = vmatprep.subr.bf16.mxu1 %v715_v8 }
  0x37   :  { %668 = vmatpush3.bf16.msra.mxu0 %v715_v8  ;;  %701 = vmatpush3.bf16.msra.mxu1 %v715_v8 }
  0x38   :  { %669 = vmatprep.subr.bf16.mxu0 %v716_v9  ;;  %694 = vmatprep.subr.bf16.mxu1 %v716_v9 }
  0x3b   :  { %670 = vmatpush3.bf16.msra.mxu0 %v716_v9  ;;  %702 = vmatpush3.bf16.msra.mxu1 %v716_v9 }
  0x3e   :  { %672 = vmatmul.mubr.bf16.vlgmr.msra.gmra.mxu0 %v718_v10  ;;  %680 = vmatmul.mubr.bf16.vlgmr.msra.gmra.mxu1 %v722_v11 }
  0x3f   :  { %675 = vmatprep.mubr.bf16.mxu0 %v719_v12  ;;  %683 = vmatprep.mubr.bf16.mxu1 %v723_v13 }
  0x46   :  { %676 = vmatmul.mubr.bf16.gmra.mxu0 %v720_v14  ;;  %684 = vmatmul.mubr.bf16.gmra.mxu1 %v724_v15 }
  0xfe   :  { %v673_v16 = vpop.f32.mrf.mxu0  ;;  %v851_v17 = vpop.f32.mrf.mxu1 }
  0xff   :  { %v468_v33 = vmul.f32 %v673_v16, %v673_v16 }
 0x100   :  { %v211_v18 = vpop.f32.mrf.mxu0  ;;  %v853_v19 = vpop.f32.mrf.mxu1 }
 0x101   :  { %v466_v24 = vmul.f32 %v211_v18, %v211_v18 }
 0x102   :  { %v674_v20 = vpop.f32.mrf.mxu0  ;;  %v855_v21 = vpop.f32.mrf.mxu1 }
 0x103   :  { %v600_v22 = vpack.c.bf16 %v674_v20, %v673_v16  ;;  %v620_v23 = vpack.c.bf16 %v855_v21, %v851_v17  ;;  %v469_v38 = vmul.f32 %v674_v20, %v674_v20 }
 0x104   :  { %v214_v25 = vpop.f32.mrf.mxu0  ;;  %v246_v26 = vpop.f32.mrf.mxu1 }
 0x105   :  { %632 = vst [vmem:[#allocation8 + $0x8] sm:$0xff] %v600_v22   ;;  %v595_v27 = vpack.c.bf16 %v214_v25, %v211_v18  ;;  %v445_v28 = vadd.f32 %v214_v25, %v211_v18  ;;  %v467_v29 = vmul.f32 %v214_v25, %v214_v25  ;;  %636 = vst [vmem:[#allocation8 + $0x28] sm:$0xff] %v620_v23  }
 0x106   :  { %v615_v30 = vpack.c.bf16 %v246_v26, %v853_v19  ;;  %v677_v31 = vpop.f32.mrf.mxu0  ;;  %v860_v32 = vpop.f32.mrf.mxu1 }
 0x107   :  { %596 = vst [vmem:[#allocation8] sm:$0xff] %v595_v27   ;;  %v446_v34 = vadd.f32 %v673_v16, %v445_v28  ;;  %v482_v35 = vadd.f32 %v467_v29, %v466_v24  ;;  %v472_v55 = vmul.f32 %v677_v31, %v677_v31 }
 0x108   :  { %635 = vst [vmem:[#allocation8 + $0x20] sm:$0xff] %v615_v30   ;;  %v227_v36 = vpop.f32.mrf.mxu0  ;;  %v259_v37 = vpop.f32.mrf.mxu1 }
 0x109   :  { %v483_v39 = vadd.f32 %v482_v35, %v468_v33  ;;  %v447_v40 = vadd.f32 %v674_v20, %v446_v34  ;;  %v470_v44 = vmul.f32 %v227_v36, %v227_v36 }
 0x10a   :  { %v678_v41 = vpop.f32.mrf.mxu0  ;;  %v686_v42 = vpop.f32.mrf.mxu1 }
 0x10b   :  { %v448_v43 = vadd.f32 %v447_v40, %v227_v36  ;;  %v484_v45 = vadd.f32 %v483_v39, %v469_v38  ;;  %v610_v46 = vpack.c.bf16 %v678_v41, %v677_v31  ;;  %v630_v48 = vpack.c.bf16 %v686_v42, %v860_v32 }
 0x10c   :  { %v230_v47 = vpop.f32.mrf.mxu0  ;;  %v262_v49 = vpop.f32.mrf.mxu1  ;;  %v473_v58 = vmul.f32 %v678_v41, %v678_v41 }
 0x10d   :  { %v485_v50 = vadd.f32 %v484_v45, %v470_v44  ;;  %634 = vst [vmem:[#allocation8 + $0x18] sm:$0xff] %v610_v46   ;;  %v605_v51 = vpack.c.bf16 %v230_v47, %v227_v36  ;;  %v449_v52 = vadd.f32 %v448_v43, %v230_v47  ;;  %v471_v53 = vmul.f32 %v230_v47, %v230_v47 }
 0x10e   :  { %638 = vst [vmem:[#allocation8 + $0x38] sm:$0xff] %v630_v48   ;;  %v625_v54 = vpack.c.bf16 %v262_v49, %v259_v37 }
 0x10f   :  { %633 = vst [vmem:[#allocation8 + $0x10] sm:$0xff] %v605_v51   ;;  %v450_v56 = vadd.f32 %v677_v31, %v449_v52  ;;  %v486_v57 = vadd.f32 %v485_v50, %v471_v53 }
 0x110   :  { %637 = vst [vmem:[#allocation8 + $0x30] sm:$0xff] %v625_v54  }
 0x111   :  { %v451_v59 = vadd.f32 %v678_v41, %v450_v56  ;;  %v487_v60 = vadd.f32 %v486_v57, %v472_v55 }
 0x112   :  { %776 = shalt.err (!%p773_p0)
}
 0x113   :  { %521 = dma.vmem_to_hbm [thread:$0]  %s516_s1, 1024, %s886_s2, [#allocation5], %s814_s15, %s814_s15, %s815_s16   ;;  %v474_v61 = vmul.f32 %v853_v19, %v853_v19  ;;  %v488_v62 = vadd.f32 %v487_v60, %v473_v58  ;;  %v452_v63 = vadd.f32 %v451_v59, %v853_v19  ;;  %v475_v1 = vmul.f32 %v246_v26, %v246_v26 }
 0x114   :  { %v476_v3 = vmul.f32 %v851_v17, %v851_v17  ;;  %v477_v6 = vmul.f32 %v855_v21, %v855_v21  ;;  %v478_v10 = vmul.f32 %v259_v37, %v259_v37  ;;  %v479_v14 = vmul.f32 %v262_v49, %v262_v49  ;;  %s818_s2 = smov [#allocation9]  }
 0x115   :  { %v453_v0 = vadd.f32 %v452_v63, %v246_v26  ;;  %v489_v2 = vadd.f32 %v488_v62, %v474_v61  ;;  %v480_v15 = vmul.f32 %v860_v32, %v860_v32  ;;  %s528_s27 = sshll.u32 %s818_s2, 4  ;;  %s529_s27 = int_to_ptr.vmem [resolvable:$true] %s528_s27 }
 0x116   :  { %s785_s28 = scalar_lea.vmem %s529_s27, 128  ;;  %p790_p2 = scmp.lt.s32.totalorder %s529_s27, %s529_s27 }
 0x117   :  { %v454_v4 = vadd.f32 %v851_v17, %v453_v0  ;;  %v490_v5 = vadd.f32 %v489_v2, %v475_v1  ;;  %v481_v17 = vmul.f32 %v686_v42, %v686_v42  ;;  %p786_p1 = scmp.ne.s32.totalorder %s529_s27, %s785_s28  ;;  %p791_p3 = scmp.lt.s32.totalorder %s785_s28, %s785_s28 }
 0x119   :  { %v491_v7 = vadd.f32 %v490_v5, %v476_v3  ;;  %v455_v8 = vadd.f32 %v855_v21, %v454_v4  ;;  %v503_v21 = vlaneseq  ;;  %p792_p4 = por %p791_p3, %p790_p2 }
 0x11b   :  { %v456_v9 = vadd.f32 %v455_v8, %v259_v37  ;;  %v492_v11 = vadd.f32 %v491_v7, %v477_v6  ;;  %v504_v30 = vshrl.u32 %v503_v21, 7  ;;  %p793_p5 = pnand %p792_p4, %p786_p1 }
 0x11d   :  { %v493_v12 = vadd.f32 %v492_v11, %v478_v10  ;;  %v457_v13 = vadd.f32 %v456_v9, %v262_v49  ;;  %vm506_vm0 = vcmp.eq.s32.totalorder %v504_v30, 1  ;;  %vm505_vm1 = vcmp.eq.s32.totalorder %v504_v30, 0 }
 0x11f   :  { %v458_v16 = vadd.f32 %v860_v32, %v457_v13  ;;  %v494_v18 = vadd.f32 %v493_v12, %v479_v14 }
 0x121   :  { %v459_v19 = vadd.f32 %v686_v42, %v458_v16  ;;  %v495_v20 = vadd.f32 %v494_v18, %v480_v15 }
 0x123   :  { %v460_v22 = vrot.slane %v459_v19, 4  ;;  %v496_v23 = vadd.f32 %v495_v20, %v481_v17 }
 0x125   :  { %v461_v24 = vadd.f32 %v460_v22, %v459_v19  ;;  %v497_v25 = vrot.slane %v496_v23, 4 }
 0x127   :  { %v462_v26 = vrot.slane %v461_v24, 2  ;;  %v498_v27 = vadd.f32 %v497_v25, %v496_v23 }
 0x129   :  { %v463_v28 = vadd.f32 %v462_v26, %v461_v24  ;;  %v499_v29 = vrot.slane %v498_v27, 2 }
 0x12b   :  { %v500_v31 = vadd.f32 %v499_v29, %v498_v27  ;;  %v464_v33 = vrot.slane %v463_v28, 1 }
 0x12d   :  { %v501_v34 = vrot.slane %v500_v31, 1  ;;  %v465_v35 = vadd.f32 %v464_v33, %v463_v28 }
 0x12f   :  { %v502_v32 = vadd.f32 %v501_v34, %v500_v31 }
 0x131   :  { %v507_v36 = vsel %vm506_vm0, %v502_v32, 0.0 }
 0x132   :  { %v508_v37 = vsel %vm505_vm1, %v465_v35, %v507_v36 }
 0x133   :  { %509 = vst [vmem:[#allocation9] sm:$0xff] %v508_v37 }
 0x134   :  { %796 = shalt.err (!%p793_p5)
}
 0x135   :  { %531 = dma.vmem_to_hbm [thread:$0]  %s529_s27, 128, %s887_s3, [#allocation10]  }
 0x136   :  { %809 = dma.done.wait [#allocation5], 1024  }
 0x137   :  { %810 = vsyncadd [#allocation5], 4294966272 }
 0x138   :  { %811 = dma.done.wait [#allocation10], 128  }
 0x139   :  { %812 = vsyncadd [#allocation10], 4294967168 }
 0x13a   :  { %538 = vsyncpa [#allocation4], 1 }
 0x13b   :  { %539 = vsyncpa [#allocation7], 1 }
 0x13c   :  { %540 = vsyncpa [#allocation5], 1 }
 0x13d   :  { %541 = vsyncpa [#allocation10], 1 }

</bundles_post_ra>
